<compile_context>
chip_gen: v7x
topology: tpu7x:2x2x1
jax: 0.10.0
libtpu: 0.0.40
codegen_flags: <defaults>
</compile_context>

<pallas_src>
import jax
import jax.numpy as jnp
from jax.experimental import pallas as pl
from jax.experimental.pallas import tpu as pltpu


def _mbstd_fused_kernel(x_ref, o_ref):
    # x_ref: (G, 1, C, HW)    o_ref: (G, 1, C + F, HW)
    G, _, C, HW = x_ref.shape
    F = o_ref.shape[2] - C
    c = C // F

    x = x_ref[...]                                    # single VMEM load of the tile
    xf = x.astype(jnp.float32)                        # per-tile fp32 upcast

    mu = jnp.mean(xf, axis=0, keepdims=True)          # (1, 1, C, HW)
    var = jnp.mean((xf - mu) ** 2, axis=0)            # (1, C, HW)
    std = jnp.sqrt(var + 1e-8)                        # (1, C, HW)

    # Fused copy-through of the original activations (out[:, :C]).
    o_ref[:, :, :C, :] = x

    inv_chw = 1.0 / float(c * HW)                     # static divisor -> constant mul
    for f in range(F):                                # F is tiny (usually 1)
        ssum = jnp.sum(std[:, f * c:(f + 1) * c, :], axis=(1, 2), keepdims=True)
        stat = ssum * inv_chw                         # (1, 1, 1) fp32
        o_ref[:, :, C + f:C + f + 1, :] = jnp.broadcast_to(
            stat[None], (G, 1, 1, HW)).astype(o_ref.dtype)


def minibatch_std_layer(x, group_size, num_channels=1):
    """Pallas implementation of MinibatchStdLayer.forward. x: (N, C, H, W)."""
    N, C, H, W = x.shape
    G = min(group_size, N) if group_size is not None else N
    F = num_channels
    assert N % G == 0, "N must be divisible by the (clamped) group size"
    assert C % F == 0, "C must be divisible by num_channels"
    M = N // G
    HW = H * W

    # (N, C, H, W) -> (G, M, C, H*W): pure view (N splits G-major, H/W merge).
    x_v = x.reshape(G, M, C, HW)

    # VMEM budget hint: double-buffered in/out blocks + fp32 temporaries.
    itemsize = x.dtype.itemsize
    need = 2 * G * HW * (C + (C + F)) * itemsize + 2 * G * C * HW * 4
    vmem_limit = None
    if need > 12 * 1024 * 1024:
        vmem_limit = int(min(need + (4 << 20), 56 << 20))
    # TODO(synk): if a single (G, C, H*W) group slice ever exceeds the VMEM
    # budget (never the case for StyleGAN mbstd shapes), add a second grid
    # axis tiling c*H*W with a scratch accumulator + pl.when finalize.

    y = pl.pallas_call(
        _mbstd_fused_kernel,
        out_shape=jax.ShapeDtypeStruct((G, M, C + F, HW), x.dtype),
        grid=(M,),
        in_specs=[pl.BlockSpec((G, 1, C, HW), lambda m: (0, m, 0, 0))],
        out_specs=pl.BlockSpec((G, 1, C + F, HW), lambda m: (0, m, 0, 0)),
        compiler_params=pltpu.CompilerParams(
            dimension_semantics=("parallel",),
            vmem_limit_bytes=vmem_limit,
        ),
    )(x_v)

    # (G, M, C+F, H*W) -> (N, C+F, H, W): pure view.
    return y.reshape(N, C + F, H, W)


def _reference(x, group_size, num_channels=1):
    """Pure-JAX mirror of the PyTorch forward, for validation."""
    N, C, H, W = x.shape
    G = min(group_size, N) if group_size is not None else N
    F = num_channels
    c = C // F
    y = x.reshape(G, -1, F, c, H, W)
    y = y - y.mean(axis=0)
    y = (y ** 2).mean(axis=0)
    y = jnp.sqrt(y + 1e-8)
    y = y.mean(axis=(2, 3, 4))
    y = y.reshape(-1, F, 1, 1)
    y = jnp.tile(y, (G, 1, H, W))
    return jnp.concatenate([x, y], axis=1)


if __name__ == "__main__":
    k1, k2 = jax.random.split(jax.random.PRNGKey(0))

    # Case 1: default num_channels=1 (the usual StyleGAN configuration).
    N, C, H, W = 8, 4, 16, 16
    group_size, num_channels = 4, 1
    x = jax.random.normal(k1, (N, C, H, W), dtype=jnp.float32)
    out = jax.block_until_ready(minibatch_std_layer(x, group_size, num_channels))
    ref = _reference(x, group_size, num_channels)
    assert out.shape == (N, C + num_channels, H, W)
    assert jnp.allclose(out, ref, atol=1e-5, rtol=1e-5)

    # Case 2: num_channels=2 exercises the multi-stat-channel path.
    N2, C2, H2, W2 = 8, 4, 8, 8
    group_size2, num_channels2 = 4, 2
    x2 = jax.random.normal(k2, (N2, C2, H2, W2), dtype=jnp.float32)
    out2 = jax.block_until_ready(minibatch_std_layer(x2, group_size2, num_channels2))
    ref2 = _reference(x2, group_size2, num_channels2)
    assert out2.shape == (N2, C2 + num_channels2, H2, W2)
    assert jnp.allclose(out2, ref2, atol=1e-5, rtol=1e-5)

    print("KERNEL_OK")
</pallas_src>

<mosaic_0001>
module attributes {stable_mosaic.version = 11 : i64} {
  func.func @_mbstd_fused_kernel(%arg0: i32, %arg1: memref<4x1x4x256xf32, #tpu.memory_space<vmem>>, %arg2: memref<4x1x5x256xf32, #tpu.memory_space<vmem>>) attributes {dimension_semantics = [#tpu.dimension_semantics<parallel>], iteration_bounds = array<i64: 2>, scalar_prefetch = 0 : i64, scratch_operands = 0 : i64, tpu.core_type = #tpu.core_type<tc>, window_params = [{transform_indices = @transform_0, window_bounds = array<i64: 4, 1, 4, 256>}, {transform_indices = @transform_1, window_bounds = array<i64: 4, 1, 5, 256>}]} {
    %c0 = arith.constant 0 : index
    %c0_0 = arith.constant 0 : index
    %c0_1 = arith.constant 0 : index
    %c0_2 = arith.constant 0 : index
    %0 = vector.load %arg1[%c0, %c0_0, %c0_1, %c0_2] : memref<4x1x4x256xf32, #tpu.memory_space<vmem>>, vector<4x1x4x256xf32>
    %cst = arith.constant dense<0.000000e+00> : vector<1x4x256xf32>
    %1 = vector.multi_reduction <add>, %0, %cst [0] : vector<4x1x4x256xf32> to vector<1x4x256xf32>
    %2 = vector.shape_cast %1 : vector<1x4x256xf32> to vector<1x1x4x256xf32>
    %cst_3 = arith.constant 4.000000e+00 : f32
    %3 = vector.broadcast %cst_3 : f32 to vector<1x1x4x256xf32>
    %4 = arith.divf %2, %3 : vector<1x1x4x256xf32>
    %5 = vector.broadcast %4 : vector<1x1x4x256xf32> to vector<4x1x4x256xf32>
    %6 = arith.subf %0, %5 : vector<4x1x4x256xf32>
    %7 = arith.mulf %6, %6 : vector<4x1x4x256xf32>
    %cst_4 = arith.constant dense<0.000000e+00> : vector<1x4x256xf32>
    %8 = vector.multi_reduction <add>, %7, %cst_4 [0] : vector<4x1x4x256xf32> to vector<1x4x256xf32>
    %cst_5 = arith.constant 4.000000e+00 : f32
    %9 = vector.broadcast %cst_5 : f32 to vector<1x4x256xf32>
    %10 = arith.divf %8, %9 : vector<1x4x256xf32>
    %cst_6 = arith.constant 9.99999993E-9 : f32
    %11 = vector.broadcast %cst_6 : f32 to vector<1x4x256xf32>
    %12 = arith.addf %10, %11 : vector<1x4x256xf32>
    %13 = math.sqrt %12 : vector<1x4x256xf32>
    %c0_7 = arith.constant 0 : index
    %c0_8 = arith.constant 0 : index
    %c0_9 = arith.constant 0 : index
    %c0_10 = arith.constant 0 : index
    %14 = vector.load %arg2[%c0_7, %c0_8, %c0_9, %c0_10] : memref<4x1x5x256xf32, #tpu.memory_space<vmem>>, vector<4x1x4x256xf32>
    tpu.vector_store %arg2[%c0_7, %c0_8, %c0_9, %c0_10], %0 {strides = array<i32>} : memref<4x1x5x256xf32, #tpu.memory_space<vmem>>, vector<4x1x4x256xf32>,
    %cst_11 = arith.constant dense<0.000000e+00> : vector<1xf32>
    %15 = vector.multi_reduction <add>, %13, %cst_11 [1, 2] : vector<1x4x256xf32> to vector<1xf32>
    %16 = vector.shape_cast %15 : vector<1xf32> to vector<1x1x1xf32>
    %cst_12 = arith.constant 9.765625E-4 : f32
    %17 = vector.broadcast %cst_12 : f32 to vector<1x1x1xf32>
    %18 = arith.mulf %16, %17 : vector<1x1x1xf32>
    %19 = vector.shape_cast %18 : vector<1x1x1xf32> to vector<1x1x1x1xf32>
    %20 = vector.shape_cast %19 : vector<1x1x1x1xf32> to vector<1x1x1x1xf32>
    %21 = vector.broadcast %20 : vector<1x1x1x1xf32> to vector<4x1x1x256xf32>
    %c0_13 = arith.constant 0 : index
    %c0_14 = arith.constant 0 : index
    %c4 = arith.constant 4 : index
    %c0_15 = arith.constant 0 : index
    %22 = vector.load %arg2[%c0_13, %c0_14, %c4, %c0_15] : memref<4x1x5x256xf32, #tpu.memory_space<vmem>>, vector<4x1x1x256xf32>
    tpu.vector_store %arg2[%c0_13, %c0_14, %c4, %c0_15], %21 {strides = array<i32>} : memref<4x1x5x256xf32, #tpu.memory_space<vmem>>, vector<4x1x1x256xf32>,
    return
  }
  func.func @transform_0(%arg0: i32) -> (i32, i32, i32, i32) {
    %c0_i32 = arith.constant 0 : i32
    %c0_i32_0 = arith.constant 0 : i32
    %c0_i32_1 = arith.constant 0 : i32
    %c0_i32_2 = arith.constant 0 : i32
    return %c0_i32, %arg0, %c0_i32_0, %c0_i32_1 : i32, i32, i32, i32
  }
  func.func @transform_1(%arg0: i32) -> (i32, i32, i32, i32) {
    %c0_i32 = arith.constant 0 : i32
    %c0_i32_0 = arith.constant 0 : i32
    %c0_i32_1 = arith.constant 0 : i32
    %c0_i32_2 = arith.constant 0 : i32
    return %c0_i32, %arg0, %c0_i32_0, %c0_i32_1 : i32, i32, i32, i32
  }
}

</mosaic_0001>

<bundles_post_ra>
// kernel: tpu_custom_call.1
= control target key start
LH: loop header
LB: loop body
LE: loop exit
PB: predicated region body
PF: predicated region fallthrough
CT: control target
= control target key end

     0   :  { %6 = vsyncpa [#allocation3], 0  ;;  %s668_s0 = inlined_call_operand.hbm [shape: f32[4,2,4,256], index: 0, kind: input, shape index: {}]   ;;  %s669_s1 = inlined_call_operand.vmem [shape: f32[4,2,5,256], index: 1, kind: output, shape index: {}]  }
   0x1   :  { %8 = vsyncpa [#allocation3 + $0x1], 0  ;;  %s510_s6 = smov 0   ;;  %s512_s7 = smov 0  }
   0x2   :  { %s514_s8 = smov 0   ;;  %s516_s9 = smov 0  }
   0x3 LB: > { %s529_s10 = sadd.s32 4294967295, %s494_s9   ;;  %s532_s11 = sadd.s32 1, %s494_s9   ;;  %s494_s9 = sphi %s516_s9, %s678_s9   ;;  %s490_s8 = sphi %s514_s8, %s677_s8   ;;  %s486_s7 = sphi %s512_s7, %s676_s7   ;;  %s482_s6 = sphi %s510_s6, %s675_s6  }
   0x4   : > { %s18_s12 = ssub.s32 %s494_s9, %s532_s11  ;;  %s21_s13 = sadd.s32 1, %s490_s8 }
   0x5   : > { %p19_p0 = scmp.eq.s32.totalorder %s18_s12, 0  ;;  %p28_p1 = scmp.ne.s32.totalorder %s490_s8, %s486_s7 }
   0x6   : > { %p29_p2 = scmp.eq.s32.totalorder %s494_s9, 0  ;;  %p34_p3 = scmp.ne.s32.totalorder %s486_s7, %s482_s6 }
   0x7   : > { %s542_s14 = scalar_select %p19_p0, %s490_s8, %s21_s13  }
   0x8   : > { %p544_p4 = por %p29_p2, %p28_p1  ;;  %p35_p5 = scmp.eq.s32.totalorder %s529_s10, 0 }
   0x9   : > { %p58_p6 = scmp.eq.s32.totalorder %s529_s10, 1  ;;  %p386_p8 = scmp.lt.s32.totalorder %s494_s9, 2 }
   0xa   : > { %p550_p7 = por %p35_p5, %p34_p3  ;;  %s84_s18 = sand.u32 1, %s490_s8  }
   0xb   : > { %p555_p9 = por %p58_p6, %p28_p1  ;;  %s363_s19 = sshll.u32 %s84_s18, 5 }
   0xc   : > { %s378_s20 = sshll.u32 %s494_s9, 7  ;;  %s88_s24 = scalar_lea.vmem [#allocation2], %s363_s19 }
   0xd   : > { %s672_s17 = scalar_select %p555_p9, 1, 0 }
   0xe   : > { %s564_s23 = scalar_lea.hbm %s668_s0, %s378_s20  ;;  %s95_s25 = sshll.u32 %s88_s24, 4  ;;  %s566_s25 = int_to_ptr.vmem [resolvable:$true] %s95_s25 }
   0xf   : > { %p570_p10 = pnand %p386_p8, %p544_p4  ;;  %s574_s27 = scalar_lea.sflag [#allocation3], %s84_s18 }
  0x10   : > { %s430_s28 = scalar_lea.hbm %s564_s23, 512  ;;  %s435_s2 = scalar_lea.hbm %s668_s0, 1024 }
  0x11   : > { %p431_p11 = scmp.ne.s32.totalorder %s564_s23, %s430_s28  ;;  %p432_p12 = pneg %p570_p10 }
  0x12   : > { %p436_p1 = scmp.lt.u32.totalorder %s564_s23, %s668_s0  ;;  %p437_p2 = scmp.lt.u32.totalorder %s435_s2, %s430_s28 }
  0x13   : > { %p433_p13 = pnand %p432_p12, %p431_p11  ;;  %p439_p4 = scmp.lt.u32.totalorder %s430_s28, %s564_s23 }
  0x14   : > { %p438_p3 = por %p437_p2, %p436_p1 }
  0x15   : > { %p434_p0 = pneg %p433_p13 }
  0x16   : > { %p440_p5 = por %p439_p4, %p438_p3 }
  0x18   : > { %p441_p6 = pnand %p440_p5, %p434_p0 }
  0x1a   : > { %444 = shalt.err (!%p441_p6)
}
  0x1b   : > { %s445_s5 = scalar_lea.vmem %s566_s25, 512  ;;  %s496_s6 = smov [#allocation2]  }
  0x1c   : > { %p446_p8 = scmp.ne.s32.totalorder %s566_s25, %s445_s5  ;;  %s450_s12 = sshll.u32 %s496_s6, 4  ;;  %s451_s12 = int_to_ptr.vmem [resolvable:$false] %s450_s12 }
  0x1d   : > { %s452_s13 = scalar_lea.vmem %s451_s12, 1024  ;;  %p453_p9 = scmp.lt.s32.totalorder %s566_s25, %s451_s12 }
  0x1e   : > { %p448_p11 = pnand %p446_p8, %p432_p12  ;;  %p454_p1 = scmp.lt.s32.totalorder %s452_s13, %s445_s5 }
  0x20   : > { %p449_p13 = pneg %p448_p11  ;;  %p455_p2 = por %p454_p1, %p453_p9 }
  0x22   : > { %p456_p3 = pnand %p455_p2, %p449_p13 }
  0x24   : > { %459 = shalt.err (!%p456_p3)
}
  0x25   : > { %s497_s15 = smov 256   ;;  %s498_s18 = smov 128  }
  0x26   : > { %s499_s19 = smov 8   ;;  %p366_p12 = scmp.ge.s32.totalorder %s494_s9, 1 }
  0x27   : > { %385 = dma.hbm_to_vmem [thread:$0]  (!%p570_p10), %s564_s23, 512, %s566_s25, %s574_s27, %s497_s15, %s498_s18, %s499_s19  }
  0x28   : > { %p103_p0 = scmp.lt.s32.totalorder %s494_s9, 3 }
  0x2a   : > { %p104_p4 = pnand %p366_p12, %p103_p0 }
  0x2b   : > { %s109_s20 = sand.u32 (!%p104_p4), 1, %s486_s7  }
  0x2c   : > { %107 = sbr.rel (%p104_p4) target bundleno = 270 (0x10e), region = 24  ;;  %s367_s21 = sshll.u32 (!%p104_p4), %s109_s20, 5 }
  0x2d   : > { %s110_s22 = scalar_lea.sflag (!%p104_p4), [#allocation3], %s109_s20  ;;  %s113_s24 = scalar_lea.vmem (!%p104_p4), [#allocation2], %s367_s21 }
  0x33   : > { %477 = dma.done.wait (%p550_p7), %s110_s22, 512  }
  0x34   : > { %479 = vsyncadd (%p550_p7), %s110_s22, 4294966784  ;;  %s368_s28 = sshll.u32 %s109_s20, 6  ;;  %vm147_vm0 = vcmask 1043456   ;;  %v131_v0 = vld [vmem:[%s113_s24] sm:$0xff]  ;;  %v132_v1 = vld [vmem:[%s113_s24 + $0x8] sm:$0xff]  ;;  %p674_p7 = scmp.ne.s32.totalorder %s672_s17, 0 }
  0x35   : > { %v133_v2 = vld [vmem:[%s113_s24 + $0x10] sm:$0xff]  ;;  %v134_v3 = vld [vmem:[%s113_s24 + $0x18] sm:$0xff]  ;;  %v139_v4 = vcombine.high %v131_v0, %v131_v0  ;;  %v140_v5 = vcombine.high %v132_v1, %v132_v1  ;;  %v148_v7 = vsel %vm147_vm0, %v131_v0, 0.0  ;;  %s610_s9 = scalar_lea.vmem [#allocation4], %s368_s28  ;;  %v149_v9 = vsel %vm147_vm0, %v132_v1, 0.0  ;;  %s379_s16 = sshll.u32 (%p674_p7), %s529_s10, 4 }
  0x36   : > { %v141_v6 = vcombine.high %v133_v2, %v133_v2  ;;  %221 = vst [vmem:[%s610_s9] sm:$0xf] %v131_v0  ;;  %223 = vst [vmem:[%s610_s9 + $0x10] sm:$0xf] %v132_v1  ;;  %v142_v8 = vcombine.high %v134_v3, %v134_v3  ;;  %v151_v10 = vsel %vm147_vm0, %v133_v2, 0.0  ;;  %v150_v11 = vadd.f32 %v149_v9, %v148_v7  ;;  %s266_s26 = scalar_lea.vmem (%p674_p7), %s669_s1, %s379_s16 }
  0x37   : > { %225 = vst [vmem:[%s610_s9 + $0x20] sm:$0xf] %v133_v2  ;;  %227 = vst [vmem:[%s610_s9 + $0x30] sm:$0xf] %v134_v3  ;;  %v155_v12 = vsel %vm147_vm0, %v139_v4, 0.0  ;;  %v156_v13 = vsel %vm147_vm0, %v140_v5, 0.0  ;;  %v241_v9 = vlaneseq }
  0x38   : > { %v158_v14 = vsel %vm147_vm0, %v141_v6, 0.0  ;;  %222 = vst [vmem:[%s610_s9 + $0x8] sm:$0xf] %v139_v4  ;;  %224 = vst [vmem:[%s610_s9 + $0x18] sm:$0xf] %v140_v5  ;;  %v153_v15 = vsel %vm147_vm0, %v134_v3, 0.0  ;;  %v157_v16 = vadd.f32 %v156_v13, %v155_v12  ;;  %v152_v17 = vadd.f32 %v151_v10, %v150_v11 }
  0x39   : > { %226 = vst [vmem:[%s610_s9 + $0x28] sm:$0xf] %v141_v6  ;;  %228 = vst [vmem:[%s610_s9 + $0x38] sm:$0xf] %v142_v8  ;;  %v160_v18 = vsel %vm147_vm0, %v142_v8, 0.0  ;;  %vm243_vm5 = vcmp.lt.s32.totalorder %v241_v9, 256 }
  0x3a   : > { %v159_v19 = vadd.f32 %v158_v14, %v157_v16  ;;  %v154_v20 = vadd.f32 %v153_v15, %v152_v17 }
  0x3c   : > { %v161_v21 = vadd.f32 %v160_v18, %v159_v19  ;;  %v163_v22 = vmul.f32 0.25, %v154_v20 }
  0x3e   : > { %v164_v23 = vmul.f32 0.25, %v161_v21 }
  0x40   : > { %v167_v24 = vcombine.low %v163_v22, %v164_v23 }
  0x42   : > { %v169_v25 = vsub.f32 %v131_v0, %v167_v24  ;;  %v170_v26 = vsub.f32 %v132_v1, %v167_v24  ;;  %v171_v27 = vsub.f32 %v133_v2, %v167_v24  ;;  %v172_v28 = vsub.f32 %v134_v3, %v167_v24 }
  0x44   : > { %v173_v29 = vmul.f32 %v169_v25, %v169_v25  ;;  %v174_v30 = vmul.f32 %v170_v26, %v170_v26  ;;  %v175_v31 = vmul.f32 %v171_v27, %v171_v27  ;;  %v176_v32 = vmul.f32 %v172_v28, %v172_v28 }
  0x46   : > { %v181_v33 = vcombine.high %v173_v29, %v173_v29  ;;  %v182_v34 = vcombine.high %v174_v30, %v174_v30  ;;  %v183_v35 = vcombine.high %v175_v31, %v175_v31  ;;  %v184_v36 = vcombine.high %v176_v32, %v176_v32 }
  0x47   : > { %v189_v37 = vsel %vm147_vm0, %v173_v29, 0.0  ;;  %v190_v38 = vsel %vm147_vm0, %v174_v30, 0.0  ;;  %v192_v39 = vsel %vm147_vm0, %v175_v31, 0.0  ;;  %v194_v44 = vsel %vm147_vm0, %v176_v32, 0.0 }
  0x48   : > { %v191_v40 = vadd.f32 %v190_v38, %v189_v37  ;;  %v196_v41 = vsel %vm147_vm0, %v181_v33, 0.0  ;;  %v197_v42 = vsel %vm147_vm0, %v182_v34, 0.0  ;;  %v199_v43 = vsel %vm147_vm0, %v183_v35, 0.0 }
  0x49   : > { %v198_v45 = vadd.f32 %v197_v42, %v196_v41  ;;  %v201_v47 = vsel %vm147_vm0, %v184_v36, 0.0 }
  0x4a   : > { %v193_v46 = vadd.f32 %v192_v39, %v191_v40 }
  0x4b   : > { %v200_v48 = vadd.f32 %v199_v43, %v198_v45 }
  0x4c   : > { %v195_v49 = vadd.f32 %v194_v44, %v193_v46 }
  0x4d   : > { %v202_v50 = vadd.f32 %v201_v47, %v200_v48 }
  0x4e   : > { %v203_v51 = vmul.f32 0.25, %v195_v49 }
  0x4f   : > { %v204_v52 = vmul.f32 0.25, %v202_v50 }
  0x50   : > { %v205_v53 = vadd.f32 1e-08, %v203_v51 }
  0x51   : > { %v206_v54 = vadd.f32 1e-08, %v204_v52 }
  0x52   : > { %426 = vrsqrt.f32 %v205_v53  ;;  %vm209_vm1 = vcmp.eq.f32.partialorder %v205_v53, inf  ;;  %v212_v56 = vand.u32 2147483648, %v205_v53  ;;  %vm211_vm2 = vcmp.eq.f32.partialorder %v205_v53, 0.0 }
  0x53   : > { %428 = vrsqrt.f32 %v206_v54  ;;  %vm216_vm3 = vcmp.eq.f32.partialorder %v206_v54, inf  ;;  %v219_v59 = vand.u32 2147483648, %v206_v54  ;;  %vm218_vm4 = vcmp.eq.f32.partialorder %v206_v54, 0.0 }
  0x5c   : > { %v427_v55 = vpop.eup %426 }
  0x5d   : > { %v429_v57 = vpop.eup %428  ;;  %v208_v58 = vmul.f32 %v427_v55, %v205_v53 }
  0x5e   : > { %v215_v60 = vmul.f32 %v429_v57, %v206_v54 }
  0x5f   : > { %v210_v61 = vsel %vm209_vm1, %v205_v53, %v208_v58 }
  0x60   : > { %v213_v62 = vsel %vm211_vm2, %v212_v56, %v210_v61  ;;  %v217_v63 = vsel %vm216_vm3, %v206_v54, %v215_v60 }
  0x61   : > { %v220_v0 = vsel %vm218_vm4, %v219_v59, %v217_v63  ;;  %v229_v1 = vsel %vm147_vm0, %v213_v62, 0.0 }
  0x62   : > { %v230_v2 = vsel %vm147_vm0, %v220_v0, 0.0 }
  0x63   : > { %v231_v3 = vadd.f32 %v230_v2, %v229_v1 }
  0x65   : > { %232 = vadd.xlane.f32.xlu0 %v231_v3 }
  0xf2   : > { %v233_v4 = vpop.xlane.xlu0 %232 }
  0xf3   : > { %v234_v5 = vrot.slane %v233_v4, 4 }
  0xf5   : > { %v235_v6 = vadd.f32 %v234_v5, %v233_v4 }
  0xf7   : > { %v236_v7 = vrot.slane %v235_v6, 2 }
  0xf9   : > { %v237_v8 = vadd.f32 %v236_v7, %v235_v6 }
  0xfb   : > { %v238_v10 = vrot.slane %v237_v8, 1 }
  0xfc   : > { %263 = sbr.rel (!%p674_p7) target bundleno = 270 (0x10e), region = 32 }
  0xfd   : > { %v239_v11 = vadd.f32 %v238_v10, %v237_v8 }
  0xff   : > { %v240_v12 = vmul.f32 0.0009765625, %v239_v11 }
 0x101   : > { %369 = vst.msk [vmem:[%s610_s9 + $0x4] ss:$8 sm:$0x3] %vm243_vm5, %v240_v12  ;;  %370 = vst.msk [vmem:[%s610_s9 + $0x14] ss:$8 sm:$0x3] %vm243_vm5, %v240_v12 }
 0x102   : > { %371 = vst.msk [vmem:[%s610_s9 + $0x24] ss:$8 sm:$0x3] %vm243_vm5, %v240_v12  ;;  %372 = vst.msk [vmem:[%s610_s9 + $0x34] ss:$8 sm:$0x3] %vm243_vm5, %v240_v12 }
 0x108   : > { %v279_v13 = vld [vmem:[%s610_s9] sm:$0xff]  ;;  %v281_v14 = vld [vmem:[%s610_s9 + $0x8] sm:$0xff]  ;;  %v283_v15 = vld [vmem:[%s610_s9 + $0x10] sm:$0xff] }
 0x109   : > { %v285_v16 = vld [vmem:[%s610_s9 + $0x18] sm:$0xff]  ;;  %v287_v17 = vld [vmem:[%s610_s9 + $0x20] sm:$0xff]  ;;  %v289_v18 = vld [vmem:[%s610_s9 + $0x28] sm:$0xff]  ;;  %280 = vst [vmem:[%s266_s26] sm:$0xff] %v279_v13 }
 0x10a   : > { %282 = vst [vmem:[%s266_s26 + $0x8] sm:$0xff] %v281_v14  ;;  %284 = vst [vmem:[%s266_s26 + $0x20] sm:$0xff] %v283_v15  ;;  %v291_v19 = vld [vmem:[%s610_s9 + $0x30] sm:$0xff]  ;;  %v293_v20 = vld [vmem:[%s610_s9 + $0x38] sm:$0xff] }
 0x10b   : > { %286 = vst [vmem:[%s266_s26 + $0x28] sm:$0xff] %v285_v16  ;;  %288 = vst [vmem:[%s266_s26 + $0x40] sm:$0xff] %v287_v17 }
 0x10c   : > { %290 = vst [vmem:[%s266_s26 + $0x48] sm:$0xff] %v289_v18  ;;  %292 = vst [vmem:[%s266_s26 + $0x60] sm:$0xff] %v291_v19 }
 0x10d   : > { %294 = vst [vmem:[%s266_s26 + $0x68] sm:$0xff] %v293_v20 }
 0x10e PF: > { %p11_p9 = scmp.ge.s32.totalorder %s532_s11, 4   ;;  %s675_s6 = smov %s486_s7 }
 0x10f   : > { %s676_s7 = smov %s490_s8  ;;  %s677_s8 = smov %s542_s14 }
 0x110   : > { %s678_s9 = smov %s532_s11  ;;  %13 = sbr.rel (!%p11_p9) target bundleno = 3 (0x3), region = 91 }
 0x117   :  { %310 = vsyncpa [#allocation3], 1 }
 0x118   :  { %312 = vsyncpa [#allocation3 + $0x1], 1 }

</bundles_post_ra>
